<compile_context>
chip_gen: v5e
topology: v5e:2x2
jax: 0.10.0
libtpu: 0.0.40
codegen_flags: <defaults>
</compile_context>

<pallas_src>
import functools

import numpy as np

import jax
import jax.numpy as jnp
from jax import lax
from jax.experimental import pallas as pl
from jax.experimental.pallas import tpu as pltpu


def _tile_bytes(shape, dtype):
    """Rough bytes of `shape` once padded to TPU (sublane, 128-lane) tiles."""
    itemsize = np.dtype(dtype).itemsize
    dims = [int(d) for d in shape]
    if not dims:
        return itemsize
    dims[-1] = -(-dims[-1] // 128) * 128
    if len(dims) >= 2:
        sub = 8 * max(1, 4 // itemsize)          # 8 rows for f32, 16 for bf16
        dims[-2] = -(-dims[-2] // sub) * sub
    n = 1
    for d in dims:
        n *= d
    return n * itemsize


def _make_biaffine_kernel(out_block, len1, bias, compute_dtype):
    b0, b1 = bias

    def kernel(*refs):
        it = iter(refs)
        x1_ref = next(it)                              # (1, len1, dim1)
        x2_ref = next(it)                              # (1, len2, dim2) untransposed
        wm_ref = next(it)                              # (out_block, dim1, dim2)
        wb1_ref = next(it) if b0 else None             # (out_block, 1, dim2)  f32
        wb2_ref = next(it) if b1 else None             # (out_block, 1, dim1)  f32
        wb12_ref = next(it) if (b0 and b1) else None   # (out_block, 1, 1)     f32
        out_ref = next(it)                             # (1, out_block, len1, len2)
        aff_ref = next(it)                             # (out_block*len1, dim2) scratch
        col_ref = next(it) if b1 else None             # (out_block, len1, 1)   scratch

        x1 = x1_ref[0]                                 # (len1, dim1)
        x2 = x2_ref[0]                                 # (len2, dim2)
        if b1:
            x1f = x1.astype(jnp.float32)               # hoisted: bias path stays f32

        # First dots: per-o (len1, dim1) @ (dim1, dim2), stacked into sublane
        # offsets of the scratch.  out_block is small by construction (the grid
        # tiles large out_features), so a static unroll is safe for code size
        # and vreg live ranges.
        for o in range(out_block):
            aff = jnp.dot(x1, wm_ref[o], preferred_element_type=jnp.float32)
            if b0:
                aff = aff + wb1_ref[o]                 # input1 "ones" column
            aff_ref[o * len1:(o + 1) * len1, :] = aff.astype(compute_dtype)
            if b1:
                # input2 "ones" column on the VPU/XLU (no N=1 MXU pushes).
                col = jnp.sum(x1f * wb2_ref[o], axis=-1, keepdims=True)   # (len1,1)
                if b0:
                    col = col + wb12_ref[o]
                col_ref[o] = col

        # One stacked second dot: (out_block*len1, dim2) contracted with x2's
        # last dim (A @ B^T form — no transpose of input2 anywhere).
        score = lax.dot_general(
            aff_ref[...], x2,
            dimension_numbers=(((1,), (1,)), ((), ())),
            preferred_element_type=jnp.float32)         # (out_block*len1, len2)
        score = score.reshape(out_block, len1, -1)      # sublane-only split
        if b1:
            score = score + col_ref[...]                # broadcast over len2
        out_ref[0] = score.astype(out_ref.dtype)

    return kernel


def prepare_biaffine_weights(weight, *, in1_features, in2_features, out_features,
                             bias=(True, True), out_block, compute_dtype):
    """Repack nn.Linear weight (out*(in2+b1), in1+b0) once (hoist for serving)."""
    b0, b1 = bool(bias[0]), bool(bias[1])
    d1p = in1_features + int(b0)
    d2p = in2_features + int(b1)
    w3 = weight.reshape(out_features, d2p, d1p)        # row r = o*d2p + j
    n_ob = -(-out_features // out_block)
    pad = n_ob * out_block - out_features

    def _pad(w):
        if pad:
            return jnp.pad(w, ((0, pad),) + ((0, 0),) * (w.ndim - 1))
        return w

    # Core bilinear block, pre-transposed so the kernel does x1 @ W directly.
    w_main = _pad(jnp.transpose(w3[:, :in2_features, :in1_features], (0, 2, 1))
                  .astype(compute_dtype))                            # (out_pad, d1, d2)
    wb1 = wb2 = wb12 = None
    if b0:
        wb1 = _pad(w3[:, :in2_features, in1_features]
                   .reshape(out_features, 1, in2_features).astype(jnp.float32))
    if b1:
        wb2 = _pad(w3[:, in2_features, :in1_features]
                   .reshape(out_features, 1, in1_features).astype(jnp.float32))
    if b0 and b1:
        wb12 = _pad(w3[:, in2_features, in1_features]
                    .reshape(out_features, 1, 1).astype(jnp.float32))
    return w_main, wb1, wb2, wb12


@functools.partial(
    jax.jit,
    static_argnames=("out_features", "bias", "out_block", "compute_dtype",
                     "out_dtype", "transpose_output", "single_buffer_weights"))
def _biaffine_apply(input1, input2, w_main, wb1, wb2, wb12, *, out_features, bias,
                    out_block, compute_dtype, out_dtype, transpose_output,
                    single_buffer_weights):
    B, len1, dim1 = input1.shape
    _, len2, dim2 = input2.shape
    b0, b1 = bias
    out_pad = w_main.shape[0]
    n_ob = out_pad // out_block

    x1 = input1.astype(compute_dtype)
    x2 = input2.astype(compute_dtype)

    def wspec(shape):
        idx = lambda ob, b: (ob, 0, 0)
        if single_buffer_weights:
            # Weight blocks only change on the outer grid axis -> one buffer
            # halves their VMEM footprint (key under v7x's 64 MiB/TC).
            return pl.BlockSpec(shape, idx, pipeline_mode=pl.Buffered(1))
        return pl.BlockSpec(shape, idx)

    operands = [x1, x2, w_main]
    in_specs = [
        pl.BlockSpec((1, len1, dim1), lambda ob, b: (b, 0, 0)),
        pl.BlockSpec((1, len2, dim2), lambda ob, b: (b, 0, 0)),
        wspec((out_block, dim1, dim2)),
    ]
    if b0:
        operands.append(wb1)
        in_specs.append(wspec((out_block, 1, dim2)))
    if b1:
        operands.append(wb2)
        in_specs.append(wspec((out_block, 1, dim1)))
    if b0 and b1:
        operands.append(wb12)
        in_specs.append(wspec((out_block, 1, 1)))

    scratch_shapes = [pltpu.VMEM((out_block * len1, dim2), compute_dtype)]
    if b1:
        scratch_shapes.append(pltpu.VMEM((out_block, len1, 1), jnp.float32))

    # Explicit VMEM budget sized to the real (tile-padded) blocks.
    wbuf = 1 if single_buffer_weights else 2
    vmem_bytes = (
        2 * _tile_bytes((len1, dim1), compute_dtype)
        + 2 * _tile_bytes((len2, dim2), compute_dtype)
        + wbuf * out_block * (_tile_bytes((dim1, dim2), compute_dtype)
                              + _tile_bytes((1, dim2), jnp.float32)
                              + _tile_bytes((1, dim1), jnp.float32)
                              + _tile_bytes((1, 1), jnp.float32))
        + 2 * out_block * _tile_bytes((len1, len2), out_dtype)
        + _tile_bytes((out_block * len1, dim2), compute_dtype)
        + out_block * _tile_bytes((len1, 1), jnp.float32))
    vmem_limit = int(min(128 * 1024 * 1024,
                         max(vmem_bytes + (4 << 20), 32 * 1024 * 1024)))

    csize = np.dtype(compute_dtype).itemsize
    osize = np.dtype(out_dtype).itemsize
    flops = 2 * B * out_pad * len1 * dim2 * (dim1 + len2)
    bytes_accessed = int(n_ob * (x1.size + x2.size) * csize
                         + w_main.size * csize
                         + B * out_pad * len1 * len2 * osize)

    kernel = _make_biaffine_kernel(out_block, len1, (b0, b1), compute_dtype)

    out = pl.pallas_call(
        kernel,
        out_shape=jax.ShapeDtypeStruct((B, out_pad, len1, len2), out_dtype),
        grid_spec=pltpu.PrefetchScalarGridSpec(
            num_scalar_prefetch=0,
            grid=(n_ob, B),          # batch innermost -> weight blocks mostly stationary
            in_specs=in_specs,
            out_specs=pl.BlockSpec((1, out_block, len1, len2),
                                   lambda ob, b: (b, ob, 0, 0)),
            scratch_shapes=scratch_shapes),
        compiler_params=pltpu.CompilerParams(
            dimension_semantics=("parallel", "parallel"),
            vmem_limit_bytes=vmem_limit),
        cost_estimate=pl.CostEstimate(flops=flops, transcendentals=0,
                                      bytes_accessed=bytes_accessed),
    )(*operands)

    out = out[:, :out_features]          # drop out_features padding (no-op if aligned)
    if transpose_output:
        # PyTorch layout (B, len2, len1, out).
        # TODO(synk): for production, fuse this transpose into the consumer (or keep
        # the (B, out, len1, len2) layout downstream) and pad len2 to a multiple of
        # 128 so kernel stores are lane-dense; here it is one extra HBM pass.
        out = jnp.transpose(out, (0, 3, 2, 1))
    return out


def biaffine_forward(input1, input2, weight, *, out_features, bias=(True, True),
                     out_block=None, compute_dtype=None, transpose_output=True):
    """Biaffine forward matching the PyTorch module's (B, len2, len1, out) output."""
    bias = (bool(bias[0]), bool(bias[1]))
    compute_dtype = np.dtype(compute_dtype if compute_dtype is not None
                             else input1.dtype)
    out_dtype = np.dtype(input1.dtype)
    if out_block is None:
        out_block = min(out_features, 8)
    out_block = max(1, min(int(out_block), int(out_features)))

    packed = prepare_biaffine_weights(
        weight, in1_features=input1.shape[2], in2_features=input2.shape[2],
        out_features=out_features, bias=bias, out_block=out_block,
        compute_dtype=compute_dtype)

    kwargs = dict(out_features=out_features, bias=bias, out_block=out_block,
                  compute_dtype=compute_dtype, out_dtype=out_dtype,
                  transpose_output=transpose_output)
    try:
        return _biaffine_apply(input1, input2, *packed,
                               single_buffer_weights=True, **kwargs)
    except Exception:
        # Fallback if this jax build rejects pipeline_mode=pl.Buffered(1).
        return _biaffine_apply(input1, input2, *packed,
                               single_buffer_weights=False, **kwargs)


def biaffine_reference(input1, input2, weight, *, out_features, bias=(True, True)):
    """Pure-JAX replica of the PyTorch forward, for correctness checking."""
    B, len1, dim1 = input1.shape
    _, len2, dim2 = input2.shape
    if bias[0]:
        input1 = jnp.concatenate(
            [input1, jnp.ones((B, len1, 1), input1.dtype)], axis=2)
        dim1 += 1
    if bias[1]:
        input2 = jnp.concatenate(
            [input2, jnp.ones((B, len2, 1), input2.dtype)], axis=2)
        dim2 += 1
    affine = jnp.einsum("bld,od->blo", input1, weight)        # (B, len1, out*d2p)
    affine = affine.reshape(B, len1 * out_features, dim2)
    biaff = jnp.einsum("bmd,bnd->bmn", affine, input2)        # (B, len1*out, len2)
    biaff = jnp.transpose(biaff, (0, 2, 1)).reshape(B, len2, len1, out_features)
    return biaff


if __name__ == "__main__":
    batch = 2
    len1, len2 = 8, 8
    in1_features, in2_features = 32, 32
    out_features = 4
    bias = (True, True)

    d1p = in1_features + int(bias[0])
    d2p = in2_features + int(bias[1])

    key = jax.random.PRNGKey(0)
    k1, k2, kw = jax.random.split(key, 3)
    input1 = jax.random.normal(k1, (batch, len1, in1_features), jnp.float32)
    input2 = jax.random.normal(k2, (batch, len2, in2_features), jnp.float32)
    # Deterministic non-zero weight (the module's reset_parameters() zeros it,
    # which would make the test trivial).
    weight = 0.05 * jax.random.normal(
        kw, (out_features * d2p, d1p), jnp.float32)

    ref = biaffine_reference(input1, input2, weight,
                             out_features=out_features, bias=bias)

    # 1) Exact-semantics path (f32 operands, matches the PyTorch module).
    out_f32 = biaffine_forward(input1, input2, weight, out_features=out_features,
                               bias=bias, out_block=2, compute_dtype=jnp.float32)
    out_f32 = jax.block_until_ready(out_f32)
    assert out_f32.shape == (batch, len2, len1, out_features), out_f32.shape
    assert jnp.allclose(out_f32, ref, atol=1e-3, rtol=1e-3), "f32 mismatch vs reference"

    # 2) MXU-friendly path (bf16 operands, f32 accumulation) — the TPU perf default.
    out_bf16 = biaffine_forward(input1, input2, weight, out_features=out_features,
                                bias=bias, out_block=2, compute_dtype=jnp.bfloat16)
    out_bf16 = jax.block_until_ready(out_bf16)
    assert out_bf16.shape == (batch, len2, len1, out_features), out_bf16.shape
    assert out_bf16.dtype == input1.dtype
    assert jnp.allclose(out_bf16, ref, atol=5e-2, rtol=5e-2), "bf16 mismatch vs reference"

    print("KERNEL_OK")
</pallas_src>

<mosaic_0001>
module attributes {stable_mosaic.version = 11 : i64} {
  func.func @kernel(%arg0: i32, %arg1: i32, %arg2: memref<1x8x32xf32, #tpu.memory_space<vmem>>, %arg3: memref<1x8x32xf32, #tpu.memory_space<vmem>>, %arg4: memref<2x32x32xf32, #tpu.memory_space<vmem>>, %arg5: memref<2x1x32xf32, #tpu.memory_space<vmem>>, %arg6: memref<2x1x32xf32, #tpu.memory_space<vmem>>, %arg7: memref<2x1x1xf32, #tpu.memory_space<vmem>>, %arg8: memref<1x2x8x8xf32, #tpu.memory_space<vmem>>, %arg9: memref<16x32xf32, #tpu.memory_space<vmem>>, %arg10: memref<2x8x1xf32, #tpu.memory_space<vmem>>) attributes {dimension_semantics = [#tpu.dimension_semantics<parallel>, #tpu.dimension_semantics<parallel>], iteration_bounds = array<i64: 2, 2>, scalar_prefetch = 0 : i64, scratch_operands = 2 : i64, tpu.core_type = #tpu.core_type<tc>, window_params = [{transform_indices = @transform_0, window_bounds = array<i64: 1, 8, 32>}, {transform_indices = @transform_1, window_bounds = array<i64: 1, 8, 32>}, {pipeline_mode = #tpu.pipeline_mode<synchronous>, transform_indices = @transform_2, window_bounds = array<i64: 2, 32, 32>}, {pipeline_mode = #tpu.pipeline_mode<synchronous>, transform_indices = @transform_3, window_bounds = array<i64: 2, 1, 32>}, {pipeline_mode = #tpu.pipeline_mode<synchronous>, transform_indices = @transform_4, window_bounds = array<i64: 2, 1, 32>}, {pipeline_mode = #tpu.pipeline_mode<synchronous>, transform_indices = @transform_5, window_bounds = array<i64: 2, 1, 1>}, {transform_indices = @transform_6, window_bounds = array<i64: 1, 2, 8, 8>}]} {
    %c0 = arith.constant 0 : index
    %c0_0 = arith.constant 0 : index
    %c0_1 = arith.constant 0 : index
    %0 = vector.load %arg2[%c0, %c0_0, %c0_1] : memref<1x8x32xf32, #tpu.memory_space<vmem>>, vector<1x8x32xf32>
    %1 = vector.shape_cast %0 : vector<1x8x32xf32> to vector<8x32xf32>
    %c0_2 = arith.constant 0 : index
    %c0_3 = arith.constant 0 : index
    %c0_4 = arith.constant 0 : index
    %2 = vector.load %arg3[%c0_2, %c0_3, %c0_4] : memref<1x8x32xf32, #tpu.memory_space<vmem>>, vector<1x8x32xf32>
    %3 = vector.shape_cast %2 : vector<1x8x32xf32> to vector<8x32xf32>
    %c0_5 = arith.constant 0 : index
    %c0_6 = arith.constant 0 : index
    %c0_7 = arith.constant 0 : index
    %4 = vector.load %arg4[%c0_5, %c0_6, %c0_7] : memref<2x32x32xf32, #tpu.memory_space<vmem>>, vector<1x32x32xf32>
    %5 = vector.shape_cast %4 : vector<1x32x32xf32> to vector<32x32xf32>
    %cst = arith.constant dense<0.000000e+00> : vector<8x32xf32>
    %6 = tpu.matmul %1, %5, %cst {dimension_numbers = #tpu.dot_dimension_numbers<[1], [0], [0], [1], [0, 0, 1, 1], [], []>} : vector<8x32xf32>, vector<32x32xf32>, vector<8x32xf32> -> vector<8x32xf32>
    %c0_8 = arith.constant 0 : index
    %c0_9 = arith.constant 0 : index
    %c0_10 = arith.constant 0 : index
    %7 = vector.load %arg5[%c0_8, %c0_9, %c0_10] : memref<2x1x32xf32, #tpu.memory_space<vmem>>, vector<1x1x32xf32>
    %8 = vector.shape_cast %7 : vector<1x1x32xf32> to vector<1x32xf32>
    %9 = vector.broadcast %8 : vector<1x32xf32> to vector<8x32xf32>
    %10 = arith.addf %6, %9 : vector<8x32xf32>
    %c0_11 = arith.constant 0 : index
    %c0_12 = arith.constant 0 : index
    %11 = vector.load %arg9[%c0_11, %c0_12] : memref<16x32xf32, #tpu.memory_space<vmem>>, vector<8x32xf32>
    tpu.vector_store %arg9[%c0_11, %c0_12], %10 {strides = array<i32>} : memref<16x32xf32, #tpu.memory_space<vmem>>, vector<8x32xf32>,
    %c0_13 = arith.constant 0 : index
    %c0_14 = arith.constant 0 : index
    %c0_15 = arith.constant 0 : index
    %12 = vector.load %arg6[%c0_13, %c0_14, %c0_15] : memref<2x1x32xf32, #tpu.memory_space<vmem>>, vector<1x1x32xf32>
    %13 = vector.shape_cast %12 : vector<1x1x32xf32> to vector<1x32xf32>
    %14 = vector.broadcast %13 : vector<1x32xf32> to vector<8x32xf32>
    %15 = arith.mulf %1, %14 : vector<8x32xf32>
    %cst_16 = arith.constant dense<0.000000e+00> : vector<8xf32>
    %16 = vector.multi_reduction <add>, %15, %cst_16 [1] : vector<8x32xf32> to vector<8xf32>
    %17 = vector.shape_cast %16 : vector<8xf32> to vector<8x1xf32>
    %c0_17 = arith.constant 0 : index
    %c0_18 = arith.constant 0 : index
    %c0_19 = arith.constant 0 : index
    %18 = vector.load %arg7[%c0_17, %c0_18, %c0_19] : memref<2x1x1xf32, #tpu.memory_space<vmem>>, vector<1x1x1xf32>
    %19 = vector.shape_cast %18 : vector<1x1x1xf32> to vector<1x1xf32>
    %20 = vector.broadcast %19 : vector<1x1xf32> to vector<8x1xf32>
    %21 = arith.addf %17, %20 : vector<8x1xf32>
    %c0_20 = arith.constant 0 : index
    %c0_21 = arith.constant 0 : index
    %c0_22 = arith.constant 0 : index
    %22 = vector.load %arg10[%c0_20, %c0_21, %c0_22] : memref<2x8x1xf32, #tpu.memory_space<vmem>>, vector<1x8x1xf32>
    %23 = vector.shape_cast %22 : vector<1x8x1xf32> to vector<8x1xf32>
    %24 = vector.shape_cast %21 : vector<8x1xf32> to vector<1x8x1xf32>
    tpu.vector_store %arg10[%c0_20, %c0_21, %c0_22], %24 {strides = array<i32>} : memref<2x8x1xf32, #tpu.memory_space<vmem>>, vector<1x8x1xf32>,
    %c1 = arith.constant 1 : index
    %c0_23 = arith.constant 0 : index
    %c0_24 = arith.constant 0 : index
    %25 = vector.load %arg4[%c1, %c0_23, %c0_24] : memref<2x32x32xf32, #tpu.memory_space<vmem>>, vector<1x32x32xf32>
    %26 = vector.shape_cast %25 : vector<1x32x32xf32> to vector<32x32xf32>
    %cst_25 = arith.constant dense<0.000000e+00> : vector<8x32xf32>
    %27 = tpu.matmul %1, %26, %cst_25 {dimension_numbers = #tpu.dot_dimension_numbers<[1], [0], [0], [1], [0, 0, 1, 1], [], []>} : vector<8x32xf32>, vector<32x32xf32>, vector<8x32xf32> -> vector<8x32xf32>
    %c1_26 = arith.constant 1 : index
    %c0_27 = arith.constant 0 : index
    %c0_28 = arith.constant 0 : index
    %28 = vector.load %arg5[%c1_26, %c0_27, %c0_28] : memref<2x1x32xf32, #tpu.memory_space<vmem>>, vector<1x1x32xf32>
    %29 = vector.shape_cast %28 : vector<1x1x32xf32> to vector<1x32xf32>
    %30 = vector.broadcast %29 : vector<1x32xf32> to vector<8x32xf32>
    %31 = arith.addf %27, %30 : vector<8x32xf32>
    %c8 = arith.constant 8 : index
    %c0_29 = arith.constant 0 : index
    %32 = vector.load %arg9[%c8, %c0_29] : memref<16x32xf32, #tpu.memory_space<vmem>>, vector<8x32xf32>
    tpu.vector_store %arg9[%c8, %c0_29], %31 {strides = array<i32>} : memref<16x32xf32, #tpu.memory_space<vmem>>, vector<8x32xf32>,
    %c1_30 = arith.constant 1 : index
    %c0_31 = arith.constant 0 : index
    %c0_32 = arith.constant 0 : index
    %33 = vector.load %arg6[%c1_30, %c0_31, %c0_32] : memref<2x1x32xf32, #tpu.memory_space<vmem>>, vector<1x1x32xf32>
    %34 = vector.shape_cast %33 : vector<1x1x32xf32> to vector<1x32xf32>
    %35 = vector.broadcast %34 : vector<1x32xf32> to vector<8x32xf32>
    %36 = arith.mulf %1, %35 : vector<8x32xf32>
    %cst_33 = arith.constant dense<0.000000e+00> : vector<8xf32>
    %37 = vector.multi_reduction <add>, %36, %cst_33 [1] : vector<8x32xf32> to vector<8xf32>
    %38 = vector.shape_cast %37 : vector<8xf32> to vector<8x1xf32>
    %c1_34 = arith.constant 1 : index
    %c0_35 = arith.constant 0 : index
    %c0_36 = arith.constant 0 : index
    %39 = vector.load %arg7[%c1_34, %c0_35, %c0_36] : memref<2x1x1xf32, #tpu.memory_space<vmem>>, vector<1x1x1xf32>
    %40 = vector.shape_cast %39 : vector<1x1x1xf32> to vector<1x1xf32>
    %41 = vector.broadcast %40 : vector<1x1xf32> to vector<8x1xf32>
    %42 = arith.addf %38, %41 : vector<8x1xf32>
    %c1_37 = arith.constant 1 : index
    %c0_38 = arith.constant 0 : index
    %c0_39 = arith.constant 0 : index
    %43 = vector.load %arg10[%c1_37, %c0_38, %c0_39] : memref<2x8x1xf32, #tpu.memory_space<vmem>>, vector<1x8x1xf32>
    %44 = vector.shape_cast %43 : vector<1x8x1xf32> to vector<8x1xf32>
    %45 = vector.shape_cast %42 : vector<8x1xf32> to vector<1x8x1xf32>
    tpu.vector_store %arg10[%c1_37, %c0_38, %c0_39], %45 {strides = array<i32>} : memref<2x8x1xf32, #tpu.memory_space<vmem>>, vector<1x8x1xf32>,
    %c0_40 = arith.constant 0 : index
    %c0_41 = arith.constant 0 : index
    %46 = vector.load %arg9[%c0_40, %c0_41] : memref<16x32xf32, #tpu.memory_space<vmem>>, vector<16x32xf32>
    %cst_42 = arith.constant dense<0.000000e+00> : vector<16x8xf32>
    %47 = tpu.matmul %46, %3, %cst_42 {dimension_numbers = #tpu.dot_dimension_numbers<[1], [1], [0], [0], [0, 0, 1, 0], [], []>} : vector<16x32xf32>, vector<8x32xf32>, vector<16x8xf32> -> vector<16x8xf32>
    %48 = vector.shape_cast %47 : vector<16x8xf32> to vector<2x8x8xf32>
    %c0_43 = arith.constant 0 : index
    %c0_44 = arith.constant 0 : index
    %c0_45 = arith.constant 0 : index
    %49 = vector.load %arg10[%c0_43, %c0_44, %c0_45] : memref<2x8x1xf32, #tpu.memory_space<vmem>>, vector<2x8x1xf32>
    %50 = vector.broadcast %49 : vector<2x8x1xf32> to vector<2x8x8xf32>
    %51 = arith.addf %48, %50 : vector<2x8x8xf32>
    %c0_46 = arith.constant 0 : index
    %c0_47 = arith.constant 0 : index
    %c0_48 = arith.constant 0 : index
    %c0_49 = arith.constant 0 : index
    %52 = vector.load %arg8[%c0_46, %c0_47, %c0_48, %c0_49] : memref<1x2x8x8xf32, #tpu.memory_space<vmem>>, vector<1x2x8x8xf32>
    %53 = vector.shape_cast %52 : vector<1x2x8x8xf32> to vector<2x8x8xf32>
    %54 = vector.shape_cast %51 : vector<2x8x8xf32> to vector<1x2x8x8xf32>
    tpu.vector_store %arg8[%c0_46, %c0_47, %c0_48, %c0_49], %54 {strides = array<i32>} : memref<1x2x8x8xf32, #tpu.memory_space<vmem>>, vector<1x2x8x8xf32>,
    return
  }
  func.func @transform_0(%arg0: i32, %arg1: i32) -> (i32, i32, i32) {
    %c0_i32 = arith.constant 0 : i32
    %c0_i32_0 = arith.constant 0 : i32
    %c0_i32_1 = arith.constant 0 : i32
    return %arg1, %c0_i32, %c0_i32_0 : i32, i32, i32
  }
  func.func @transform_1(%arg0: i32, %arg1: i32) -> (i32, i32, i32) {
    %c0_i32 = arith.constant 0 : i32
    %c0_i32_0 = arith.constant 0 : i32
    %c0_i32_1 = arith.constant 0 : i32
    return %arg1, %c0_i32, %c0_i32_0 : i32, i32, i32
  }
  func.func @transform_2(%arg0: i32, %arg1: i32) -> (i32, i32, i32) {
    %c0_i32 = arith.constant 0 : i32
    %c0_i32_0 = arith.constant 0 : i32
    %c0_i32_1 = arith.constant 0 : i32
    return %arg0, %c0_i32, %c0_i32_0 : i32, i32, i32
  }
  func.func @transform_3(%arg0: i32, %arg1: i32) -> (i32, i32, i32) {
    %c0_i32 = arith.constant 0 : i32
    %c0_i32_0 = arith.constant 0 : i32
    %c0_i32_1 = arith.constant 0 : i32
    return %arg0, %c0_i32, %c0_i32_0 : i32, i32, i32
  }
  func.func @transform_4(%arg0: i32, %arg1: i32) -> (i32, i32, i32) {
    %c0_i32 = arith.constant 0 : i32
    %c0_i32_0 = arith.constant 0 : i32
    %c0_i32_1 = arith.constant 0 : i32
    return %arg0, %c0_i32, %c0_i32_0 : i32, i32, i32
  }
  func.func @transform_5(%arg0: i32, %arg1: i32) -> (i32, i32, i32) {
    %c0_i32 = arith.constant 0 : i32
    %c0_i32_0 = arith.constant 0 : i32
    %c0_i32_1 = arith.constant 0 : i32
    return %arg0, %c0_i32, %c0_i32_0 : i32, i32, i32
  }
  func.func @transform_6(%arg0: i32, %arg1: i32) -> (i32, i32, i32, i32) {
    %c0_i32 = arith.constant 0 : i32
    %c0_i32_0 = arith.constant 0 : i32
    %c0_i32_1 = arith.constant 0 : i32
    return %arg1, %arg0, %c0_i32, %c0_i32_0 : i32, i32, i32, i32
  }
}

module attributes {stable_mosaic.version = 11 : i64} {
  func.func @kernel(%arg0: i32, %arg1: i32, %arg2: memref<1x8x32xf32, #tpu.memory_space<vmem>>, %arg3: memref<1x8x32xf32, #tpu.memory_space<vmem>>, %arg4: memref<2x32x32xf32, #tpu.memory_space<vmem>>, %arg5: memref<2x1x32xf32, #tpu.memory_space<vmem>>, %arg6: memref<2x1x32xf32, #tpu.memory_space<vmem>>, %arg7: memref<2x1x1xf32, #tpu.memory_space<vmem>>, %arg8: memref<1x2x8x8xf32, #tpu.memory_space<vmem>>, %arg9: memref<16x32xf32, #tpu.memory_space<vmem>>, %arg10: memref<2x8x1xf32, #tpu.memory_space<vmem>>) attributes {dimension_semantics = [#tpu.dimension_semantics<parallel>, #tpu.dimension_semantics<parallel>], iteration_bounds = array<i64: 2, 2>, scalar_prefetch = 0 : i64, scratch_operands = 2 : i64, tpu.core_type = #tpu.core_type<tc>, window_params = [{transform_indices = @transform_0, window_bounds = array<i64: 1, 8, 32>}, {transform_indices = @transform_1, window_bounds = array<i64: 1, 8, 32>}, {transform_indices = @transform_2, window_bounds = array<i64: 2, 32, 32>}, {transform_indices = @transform_3, window_bounds = array<i64: 2, 1, 32>}, {transform_indices = @transform_4, window_bounds = array<i64: 2, 1, 32>}, {transform_indices = @transform_5, window_bounds = array<i64: 2, 1, 1>}, {transform_indices = @transform_6, window_bounds = array<i64: 1, 2, 8, 8>}]} {
    %c0 = arith.constant 0 : index
    %c0_0 = arith.constant 0 : index
    %c0_1 = arith.constant 0 : index
    %0 = vector.load %arg2[%c0, %c0_0, %c0_1] : memref<1x8x32xf32, #tpu.memory_space<vmem>>, vector<1x8x32xf32>
    %1 = vector.shape_cast %0 : vector<1x8x32xf32> to vector<8x32xf32>
    %c0_2 = arith.constant 0 : index
    %c0_3 = arith.constant 0 : index
    %c0_4 = arith.constant 0 : index
    %2 = vector.load %arg3[%c0_2, %c0_3, %c0_4] : memref<1x8x32xf32, #tpu.memory_space<vmem>>, vector<1x8x32xf32>
    %3 = vector.shape_cast %2 : vector<1x8x32xf32> to vector<8x32xf32>
    %c0_5 = arith.constant 0 : index
    %c0_6 = arith.constant 0 : index
    %c0_7 = arith.constant 0 : index
    %4 = vector.load %arg4[%c0_5, %c0_6, %c0_7] : memref<2x32x32xf32, #tpu.memory_space<vmem>>, vector<1x32x32xf32>
    %5 = vector.shape_cast %4 : vector<1x32x32xf32> to vector<32x32xf32>
    %cst = arith.constant dense<0.000000e+00> : vector<8x32xf32>
    %6 = tpu.matmul %1, %5, %cst {dimension_numbers = #tpu.dot_dimension_numbers<[1], [0], [0], [1], [0, 0, 1, 1], [], []>} : vector<8x32xf32>, vector<32x32xf32>, vector<8x32xf32> -> vector<8x32xf32>
    %c0_8 = arith.constant 0 : index
    %c0_9 = arith.constant 0 : index
    %c0_10 = arith.constant 0 : index
    %7 = vector.load %arg5[%c0_8, %c0_9, %c0_10] : memref<2x1x32xf32, #tpu.memory_space<vmem>>, vector<1x1x32xf32>
    %8 = vector.shape_cast %7 : vector<1x1x32xf32> to vector<1x32xf32>
    %9 = vector.broadcast %8 : vector<1x32xf32> to vector<8x32xf32>
    %10 = arith.addf %6, %9 : vector<8x32xf32>
    %c0_11 = arith.constant 0 : index
    %c0_12 = arith.constant 0 : index
    %11 = vector.load %arg9[%c0_11, %c0_12] : memref<16x32xf32, #tpu.memory_space<vmem>>, vector<8x32xf32>
    tpu.vector_store %arg9[%c0_11, %c0_12], %10 {strides = array<i32>} : memref<16x32xf32, #tpu.memory_space<vmem>>, vector<8x32xf32>,
    %c0_13 = arith.constant 0 : index
    %c0_14 = arith.constant 0 : index
    %c0_15 = arith.constant 0 : index
    %12 = vector.load %arg6[%c0_13, %c0_14, %c0_15] : memref<2x1x32xf32, #tpu.memory_space<vmem>>, vector<1x1x32xf32>
    %13 = vector.shape_cast %12 : vector<1x1x32xf32> to vector<1x32xf32>
    %14 = vector.broadcast %13 : vector<1x32xf32> to vector<8x32xf32>
    %15 = arith.mulf %1, %14 : vector<8x32xf32>
    %cst_16 = arith.constant dense<0.000000e+00> : vector<8xf32>
    %16 = vector.multi_reduction <add>, %15, %cst_16 [1] : vector<8x32xf32> to vector<8xf32>
    %17 = vector.shape_cast %16 : vector<8xf32> to vector<8x1xf32>
    %c0_17 = arith.constant 0 : index
    %c0_18 = arith.constant 0 : index
    %c0_19 = arith.constant 0 : index
    %18 = vector.load %arg7[%c0_17, %c0_18, %c0_19] : memref<2x1x1xf32, #tpu.memory_space<vmem>>, vector<1x1x1xf32>
    %19 = vector.shape_cast %18 : vector<1x1x1xf32> to vector<1x1xf32>
    %20 = vector.broadcast %19 : vector<1x1xf32> to vector<8x1xf32>
    %21 = arith.addf %17, %20 : vector<8x1xf32>
    %c0_20 = arith.constant 0 : index
    %c0_21 = arith.constant 0 : index
    %c0_22 = arith.constant 0 : index
    %22 = vector.load %arg10[%c0_20, %c0_21, %c0_22] : memref<2x8x1xf32, #tpu.memory_space<vmem>>, vector<1x8x1xf32>
    %23 = vector.shape_cast %22 : vector<1x8x1xf32> to vector<8x1xf32>
    %24 = vector.shape_cast %21 : vector<8x1xf32> to vector<1x8x1xf32>
    tpu.vector_store %arg10[%c0_20, %c0_21, %c0_22], %24 {strides = array<i32>} : memref<2x8x1xf32, #tpu.memory_space<vmem>>, vector<1x8x1xf32>,
    %c1 = arith.constant 1 : index
    %c0_23 = arith.constant 0 : index
    %c0_24 = arith.constant 0 : index
    %25 = vector.load %arg4[%c1, %c0_23, %c0_24] : memref<2x32x32xf32, #tpu.memory_space<vmem>>, vector<1x32x32xf32>
    %26 = vector.shape_cast %25 : vector<1x32x32xf32> to vector<32x32xf32>
    %cst_25 = arith.constant dense<0.000000e+00> : vector<8x32xf32>
    %27 = tpu.matmul %1, %26, %cst_25 {dimension_numbers = #tpu.dot_dimension_numbers<[1], [0], [0], [1], [0, 0, 1, 1], [], []>} : vector<8x32xf32>, vector<32x32xf32>, vector<8x32xf32> -> vector<8x32xf32>
    %c1_26 = arith.constant 1 : index
    %c0_27 = arith.constant 0 : index
    %c0_28 = arith.constant 0 : index
    %28 = vector.load %arg5[%c1_26, %c0_27, %c0_28] : memref<2x1x32xf32, #tpu.memory_space<vmem>>, vector<1x1x32xf32>
    %29 = vector.shape_cast %28 : vector<1x1x32xf32> to vector<1x32xf32>
    %30 = vector.broadcast %29 : vector<1x32xf32> to vector<8x32xf32>
    %31 = arith.addf %27, %30 : vector<8x32xf32>
    %c8 = arith.constant 8 : index
    %c0_29 = arith.constant 0 : index
    %32 = vector.load %arg9[%c8, %c0_29] : memref<16x32xf32, #tpu.memory_space<vmem>>, vector<8x32xf32>
    tpu.vector_store %arg9[%c8, %c0_29], %31 {strides = array<i32>} : memref<16x32xf32, #tpu.memory_space<vmem>>, vector<8x32xf32>,
    %c1_30 = arith.constant 1 : index
    %c0_31 = arith.constant 0 : index
    %c0_32 = arith.constant 0 : index
    %33 = vector.load %arg6[%c1_30, %c0_31, %c0_32] : memref<2x1x32xf32, #tpu.memory_space<vmem>>, vector<1x1x32xf32>
    %34 = vector.shape_cast %33 : vector<1x1x32xf32> to vector<1x32xf32>
    %35 = vector.broadcast %34 : vector<1x32xf32> to vector<8x32xf32>
    %36 = arith.mulf %1, %35 : vector<8x32xf32>
    %cst_33 = arith.constant dense<0.000000e+00> : vector<8xf32>
    %37 = vector.multi_reduction <add>, %36, %cst_33 [1] : vector<8x32xf32> to vector<8xf32>
    %38 = vector.shape_cast %37 : vector<8xf32> to vector<8x1xf32>
    %c1_34 = arith.constant 1 : index
    %c0_35 = arith.constant 0 : index
    %c0_36 = arith.constant 0 : index
    %39 = vector.load %arg7[%c1_34, %c0_35, %c0_36] : memref<2x1x1xf32, #tpu.memory_space<vmem>>, vector<1x1x1xf32>
    %40 = vector.shape_cast %39 : vector<1x1x1xf32> to vector<1x1xf32>
    %41 = vector.broadcast %40 : vector<1x1xf32> to vector<8x1xf32>
    %42 = arith.addf %38, %41 : vector<8x1xf32>
    %c1_37 = arith.constant 1 : index
    %c0_38 = arith.constant 0 : index
    %c0_39 = arith.constant 0 : index
    %43 = vector.load %arg10[%c1_37, %c0_38, %c0_39] : memref<2x8x1xf32, #tpu.memory_space<vmem>>, vector<1x8x1xf32>
    %44 = vector.shape_cast %43 : vector<1x8x1xf32> to vector<8x1xf32>
    %45 = vector.shape_cast %42 : vector<8x1xf32> to vector<1x8x1xf32>
    tpu.vector_store %arg10[%c1_37, %c0_38, %c0_39], %45 {strides = array<i32>} : memref<2x8x1xf32, #tpu.memory_space<vmem>>, vector<1x8x1xf32>,
    %c0_40 = arith.constant 0 : index
    %c0_41 = arith.constant 0 : index
    %46 = vector.load %arg9[%c0_40, %c0_41] : memref<16x32xf32, #tpu.memory_space<vmem>>, vector<16x32xf32>
    %cst_42 = arith.constant dense<0.000000e+00> : vector<16x8xf32>
    %47 = tpu.matmul %46, %3, %cst_42 {dimension_numbers = #tpu.dot_dimension_numbers<[1], [1], [0], [0], [0, 0, 1, 0], [], []>} : vector<16x32xf32>, vector<8x32xf32>, vector<16x8xf32> -> vector<16x8xf32>
    %48 = vector.shape_cast %47 : vector<16x8xf32> to vector<2x8x8xf32>
    %c0_43 = arith.constant 0 : index
    %c0_44 = arith.constant 0 : index
    %c0_45 = arith.constant 0 : index
    %49 = vector.load %arg10[%c0_43, %c0_44, %c0_45] : memref<2x8x1xf32, #tpu.memory_space<vmem>>, vector<2x8x1xf32>
    %50 = vector.broadcast %49 : vector<2x8x1xf32> to vector<2x8x8xf32>
    %51 = arith.addf %48, %50 : vector<2x8x8xf32>
    %c0_46 = arith.constant 0 : index
    %c0_47 = arith.constant 0 : index
    %c0_48 = arith.constant 0 : index
    %c0_49 = arith.constant 0 : index
    %52 = vector.load %arg8[%c0_46, %c0_47, %c0_48, %c0_49] : memref<1x2x8x8xf32, #tpu.memory_space<vmem>>, vector<1x2x8x8xf32>
    %53 = vector.shape_cast %52 : vector<1x2x8x8xf32> to vector<2x8x8xf32>
    %54 = vector.shape_cast %51 : vector<2x8x8xf32> to vector<1x2x8x8xf32>
    tpu.vector_store %arg8[%c0_46, %c0_47, %c0_48, %c0_49], %54 {strides = array<i32>} : memref<1x2x8x8xf32, #tpu.memory_space<vmem>>, vector<1x2x8x8xf32>,
    return
  }
  func.func @transform_0(%arg0: i32, %arg1: i32) -> (i32, i32, i32) {
    %c0_i32 = arith.constant 0 : i32
    %c0_i32_0 = arith.constant 0 : i32
    %c0_i32_1 = arith.constant 0 : i32
    return %arg1, %c0_i32, %c0_i32_0 : i32, i32, i32
  }
  func.func @transform_1(%arg0: i32, %arg1: i32) -> (i32, i32, i32) {
    %c0_i32 = arith.constant 0 : i32
    %c0_i32_0 = arith.constant 0 : i32
    %c0_i32_1 = arith.constant 0 : i32
    return %arg1, %c0_i32, %c0_i32_0 : i32, i32, i32
  }
  func.func @transform_2(%arg0: i32, %arg1: i32) -> (i32, i32, i32) {
    %c0_i32 = arith.constant 0 : i32
    %c0_i32_0 = arith.constant 0 : i32
    %c0_i32_1 = arith.constant 0 : i32
    return %arg0, %c0_i32, %c0_i32_0 : i32, i32, i32
  }
  func.func @transform_3(%arg0: i32, %arg1: i32) -> (i32, i32, i32) {
    %c0_i32 = arith.constant 0 : i32
    %c0_i32_0 = arith.constant 0 : i32
    %c0_i32_1 = arith.constant 0 : i32
    return %arg0, %c0_i32, %c0_i32_0 : i32, i32, i32
  }
  func.func @transform_4(%arg0: i32, %arg1: i32) -> (i32, i32, i32) {
    %c0_i32 = arith.constant 0 : i32
    %c0_i32_0 = arith.constant 0 : i32
    %c0_i32_1 = arith.constant 0 : i32
    return %arg0, %c0_i32, %c0_i32_0 : i32, i32, i32
  }
  func.func @transform_5(%arg0: i32, %arg1: i32) -> (i32, i32, i32) {
    %c0_i32 = arith.constant 0 : i32
    %c0_i32_0 = arith.constant 0 : i32
    %c0_i32_1 = arith.constant 0 : i32
    return %arg0, %c0_i32, %c0_i32_0 : i32, i32, i32
  }
  func.func @transform_6(%arg0: i32, %arg1: i32) -> (i32, i32, i32, i32) {
    %c0_i32 = arith.constant 0 : i32
    %c0_i32_0 = arith.constant 0 : i32
    %c0_i32_1 = arith.constant 0 : i32
    return %arg1, %arg0, %c0_i32, %c0_i32_0 : i32, i32, i32, i32
  }
}

</mosaic_0001>

<bundles_post_ra>
// kernel: _biaffine_apply.1
= control target key start
LH: loop header
LB: loop body
LE: loop exit
PB: predicated region body
PF: predicated region fallthrough
CT: control target
= control target key end

     0   :  { %s1342_s0 = inlined_call_operand.hbm [shape: f32[2,8,32], index: 0, kind: input, shape index: {}]   ;;  %s1343_s1 = inlined_call_operand.hbm [shape: f32[2,8,32], index: 1, kind: input, shape index: {}]   ;;  %s1344_s2 = inlined_call_operand.hbm [shape: f32[4,32,32], index: 2, kind: input, shape index: {}]   ;;  %s1345_s3 = inlined_call_operand.vmem [shape: f32[4,1,32], index: 3, kind: input, shape index: {}]   ;;  %s1346_s4 = inlined_call_operand.vmem [shape: f32[4,1,32], index: 4, kind: input, shape index: {}]   ;;  %s1347_s5 = inlined_call_operand.vmem [shape: f32[4,1,1], index: 5, kind: input, shape index: {}]   ;;  %s1348_s6 = inlined_call_operand.vmem [shape: f32[2,4,8,8], index: 6, kind: output, shape index: {}]  }
   0x1   :  { %1356 = sst [smem:[#allocation20_spill]] %s1344_s2 }
   0x2   :  { %1357 = sst [smem:[#allocation21_spill]] %s1348_s6 }
   0x3   :  { %11 = vsyncpa [#allocation5], 0 }
   0x4   :  { %13 = vsyncpa [#allocation5 + $0x1], 0 }
   0x5   :  { %14 = vsyncpa [#allocation7], 0 }
   0x6   :  { %16 = vsyncpa [#allocation7 + $0x1], 0  ;;  %s1110_s21 = smov 0   ;;  %s1112_s22 = smov 0  }
   0x7   :  { %s1114_s23 = smov 0   ;;  %s1116_s24 = smov 0  }
   0x8   :  { %s1118_s25 = smov 0   ;;  %s1120_s26 = smov 0  }
   0x9   :  { %s1122_s27 = smov 0   ;;  %s1124_s28 = smov 0  }
   0xa   :  { %s1126_s29 = smov 0   ;;  %s1128_s30 = smov 0  }
   0xb   :  { %s1130_s7 = smov 0  }
   0xc LB: > { %1358 = sst [smem:[#allocation12_spill]] %s1033_s22  ;;  %s1349_s8 = sadd.s32 4294967295, %s1069_s7   ;;  %s1069_s7 = sphi %s1130_s7, %s22_s7   ;;  %s1065_s30 = sphi %s1128_s30, %s1390_s30   ;;  %s1061_s29 = sphi %s1126_s29, %s1389_s29   ;;  %s1057_s28 = sphi %s1124_s28, %s1380_s28   ;;  %s1053_s27 = sphi %s1122_s27, %s1388_s27   ;;  %s1049_s26 = sphi %s1120_s26, %s1387_s26   ;;  %s1045_s25 = sphi %s1118_s25, %s1386_s25   ;;  %s1041_s24 = sphi %s1116_s24, %s1385_s24   ;;  %s1037_s23 = sphi %s1114_s23, %s1384_s23   ;;  %s1033_s22 = sphi %s1112_s22, %s1383_s22   ;;  %s1029_s21 = sphi %s1110_s21, %s1375_s21  }
   0xd   : > { %1359 = sst [smem:[#allocation13_spill]] %s1049_s26  ;;  %p106_p0 = scmp.ne.s32.totalorder %s1033_s22, %s1029_s21 }
   0xe   : > { %1360 = sst [smem:[#allocation14_spill]] %s1061_s29  ;;  %p1167_p1 = scmp.eq.s32.totalorder %s1349_s8, 0 }
   0xf   : > { %1361 = sst [smem:[#allocation15_spill]] %s1065_s30  ;;  %p732_p2 = scmp.ge.s32.totalorder %s1069_s7, 1 }
  0x10   : > { %p223_p3 = scmp.lt.s32.totalorder %s1069_s7, 5  ;;  %s761_s10 = sshll.u32 %s1057_s28, 6 }
  0x11   : > { %p1176_p4 = por %p106_p0, %p1167_p1  ;;  %s1364_s2 = sld [smem:[#allocation20_spill]] }
  0x12   : > { %p1183_p5 = pnand %p732_p2, %p223_p3  ;;  %s1071_s17 = smov [#allocation8]  }
  0x13   : > { %s240_s18 = sshll.u32 %s1071_s17, 4  ;;  %s241_s18 = int_to_ptr.vmem [resolvable:$true] %s240_s18 }
  0x14   : > { %p769_p6 = pneg %p1183_p5 }
  0x16   : > { %p1191_p7 = pnand %p769_p6, %p1176_p4 }
  0x17   : > { %s237_s14 = scalar_lea.hbm %s1364_s2, %s761_s10  ;;  %s888_s13 = scalar_lea.hbm %s1364_s2, 128 }
  0x18   : > { %s238_s16 = sshll.u32 %s237_s14, 4  ;;  %p885_p9 = pneg %p1191_p7  ;;  %s239_s16 = int_to_ptr.hbm [resolvable:$true] %s238_s16 }
  0x19   : > { %s881_s20 = sshra.s32 %s239_s16, 4  ;;  %s882_s20 = int_to_ptr.hbm [resolvable:$true] %s881_s20 }
  0x1a   : > { %s883_s21 = scalar_lea.hbm %s882_s20, 64  ;;  %p889_p12 = scmp.lt.s32.totalorder %s882_s20, %s1364_s2 }
  0x1b   : > { %p884_p8 = scmp.ne.s32.totalorder %s882_s20, %s883_s21  ;;  %p890_p13 = scmp.lt.s32.totalorder %s888_s13, %s883_s21 }
  0x1d   : > { %p886_p10 = pnand %p885_p9, %p884_p8  ;;  %p891_p0 = por %p890_p13, %p889_p12 }
  0x1f   : > { %p887_p11 = pneg %p886_p10 }
  0x21   : > { %p892_p2 = pnand %p891_p0, %p887_p11 }
  0x23   : > { %895 = shalt.err (!%p892_p2)
}
  0x24   : > { %s1072_s8 = smov 128   ;;  %s1073_s10 = smov 8  }
  0x25   : > { %772 = dma.hbm_to_vmem [thread:$0]  (!%p1191_p7), %s239_s16, 1024, %s241_s18, [#allocation7], %s1072_s8, %s1072_s8, %s1073_s10  }
  0x26   : > { %s31_s20 = sadd.s32 1, %s1061_s29  ;;  %s34_s21 = sadd.s32 1, %s1065_s30 }
  0x27   : > { %p32_p3 = scmp.ge.s32.totalorder %s31_s20, 2  ;;  %s41_s12 = sadd.s32 1, %s1049_s26 }
  0x28   : > { %p48_p6 = scmp.ne.s32.totalorder %s1049_s26, %s1045_s25  ;;  %p49_p8 = scmp.eq.s32.totalorder %s1069_s7, 0 }
  0x29   : > { %s1392_s20 = smov (%p32_p3, %s31_s20), 0  ;;  %s1394_s21 = smov (!%p32_p3, %s34_s21), %s1065_s30 }
  0x2a   : > { %1367 = sst [smem:[#allocation16_spill]] %s1392_s20  ;;  %s38_s13 = ssub.s32 %s1061_s29, %s1392_s20 }
  0x2b   : > { %p1216_p9 = por %p49_p8, %p48_p6  ;;  %p36_p7 = scmp.ge.s32.totalorder %s1394_s21, 2 }
  0x2c   : > { %p39_p10 = scmp.eq.s32.totalorder %s38_s13, 0  ;;  %p54_p11 = scmp.ne.s32.totalorder %s1045_s25, %s1041_s24 }
  0x2d   : > { %s93_s16 = sadd.s32 1, %s1037_s23  ;;  %s1396_s21 = smov (%p36_p7, %s1394_s21), 0 }
  0x2e   : > { %1369 = sst [smem:[#allocation17_spill]] %s1396_s21  ;;  %p1230_p12 = por %p1167_p1, %p54_p11 }
  0x2f   : > { %s1226_s18 = scalar_select %p39_p10, %s1049_s26, %s41_s12  }
  0x30   : > { %s90_s14 = ssub.s32 %s1065_s30, %s1396_s21  ;;  %p780_p0 = scmp.lt.s32.totalorder %s1069_s7, 4 }
  0x31   : > { %1370 = sst [smem:[#allocation18_spill]] %s1226_s18  ;;  %p91_p13 = scmp.eq.s32.totalorder %s90_s14, 0 }
  0x32   : > { %s278_s17 = sand.u32 1, %s1049_s26   ;;  %s738_s10 = sshll.u32 %s1061_s29, 3 }
  0x33   : > { %s1240_s13 = scalar_select %p91_p13, %s1037_s23, %s93_s16  }
  0x34   : > { %s737_s24 = sshll.u32 %s278_s17, 3  ;;  %s286_s22 = scalar_lea.hbm %s1342_s0, %s738_s10 }
  0x35   : > { %1372 = sst [smem:[#allocation19_spill]] %s1240_s13  ;;  %s288_s12 = sshll.u32 %s286_s22, 4  ;;  %s289_s12 = int_to_ptr.hbm [resolvable:$true] %s288_s12 }
  0x36   : > { %s282_s18 = scalar_lea.vmem [#allocation4], %s737_s24  ;;  %p774_p1 = pnand %p780_p0, %p1216_p9 }
  0x37   : > { %s290_s9 = sshll.u32 %s282_s18, 4  ;;  %s305_s14 = scalar_lea.hbm %s1343_s1, %s738_s10  ;;  %s291_s9 = int_to_ptr.vmem [resolvable:$true] %s290_s9 }
  0x38   : > { %s297_s30 = sand.u32 1, %s1069_s7   ;;  %s279_s29 = scalar_lea.sflag [#allocation5], %s278_s17 }
  0x39   : > { %776 = dma.hbm_to_vmem [thread:$0]  (!%p774_p1), %s289_s12, 128, %s291_s9, %s279_s29  }
  0x3a   : > { %s307_s16 = sshll.u32 %s305_s14, 4  ;;  %s301_s26 = scalar_lea.vmem [#allocation6], %s737_s24  ;;  %s308_s16 = int_to_ptr.hbm [resolvable:$true] %s307_s16 }
  0x3b   : > { %s309_s13 = sshll.u32 %s301_s26, 4  ;;  %s298_s2 = scalar_lea.sflag [#allocation7], %s297_s30  ;;  %s310_s13 = int_to_ptr.vmem [resolvable:$true] %s309_s13 }
  0x3c   : > { %779 = dma.hbm_to_vmem [thread:$0]  (!%p774_p1), %s308_s16, 128, %s310_s13, %s298_s2  }
  0x3d   : > { %318 = sbr.rel (%p1183_p5) target bundleno = 353 (0x161), region = 44  ;;  %s320_s22 = sand.u32 (!%p1183_p5), 1, %s1045_s25  }
  0x3e   : > { %s1254_s20 = sshll.u32 (!%p1183_p5), %s320_s22, 3  ;;  %s321_s6 = scalar_lea.sflag (!%p1183_p5), [#allocation5], %s320_s22 }
  0x3f   : > { %s324_s21 = scalar_lea.vmem (!%p1183_p5), [#allocation4], %s1254_s20 }
  0x42   : > { %1016 = dma.done.wait (%p1230_p12), %s321_s6, 128  }
  0x43   : > { %1018 = vsyncadd (%p1230_p12), %s321_s6, 4294967168  ;;  %s1373_s26 = sadd.s32 4294967295, %s1069_s7   ;;  %s334_s15 = scalar_lea.vmem [#allocation6], %s1254_s20 }
  0x44   : > { %s330_s29 = sand.u32 1, %s1373_s26  }
  0x45   : > { %s331_s30 = scalar_lea.sflag [#allocation7], %s330_s29 }
  0x46   : > { %1020 = dma.done.wait (%p1230_p12), %s331_s30, 128  }
  0x47   : > { %1022 = vsyncadd (%p1230_p12), %s331_s30, 4294967168 }
  0x48   : > { %1024 = dma.done.wait (%p1176_p4), [#allocation7], 1024  }
  0x49   : > { %1026 = vsyncadd (%p1176_p4), [#allocation7], 4294966272  ;;  %s744_s8 = sshll.u32 %s1057_s28, 1  ;;  %v421_v0 = vld [vmem:[#allocation8 + $0x18] sm:$0xff]  ;;  %v420_v2 = vld [vmem:[#allocation8 + $0x10] sm:$0xff]  ;;  %vm426_vm0 = vcmask 261120  }
  0x4a   : > { %p392_p5 = scmp.lt.s32.totalorder %s744_s8, 3  ;;  %v470_v1 = vld [vmem:[#allocation8 + $0x38] sm:$0xff]  ;;  %442 = vmatpush.msra.mxu0 %v421_v0  ;;  %v469_v3 = vld [vmem:[#allocation8 + $0x30] sm:$0xff]  ;;  %v419_v4 = vld [vmem:[#allocation8 + $0x8] sm:$0xff]  ;;  %v1074_v16 = vmov 0   ;;  %vm464_vm1 = vcmask 7168  }
  0x4b   : > { %488 = vmatpush.msra.mxu1 %v470_v1  ;;  %v468_v5 = vld [vmem:[#allocation8 + $0x28] sm:$0xff]  ;;  %v418_v6 = vld [vmem:[#allocation8] sm:$0xff]  ;;  %v417_v15 = vld [vmem:[%s334_s15] sm:$0xff]  ;;  %873 = vset.pattern.permute.xlu1 %v1074_v16  ;;  %p407_p4 = scmp.lt.s32.totalorder %s1053_s27, 1  ;;  %s1374_s20 = sld [smem:[#allocation21_spill]]  ;;  %vm562_vm2 = vcmask 64512  }
  0x4c   : > { %s1398_s8 = smov (!%p392_p5, %s744_s8), 3  ;;  %443 = vmatpush.msra.mxu0 %v420_v2  ;;  %v467_v8 = vld [vmem:[#allocation8 + $0x20] sm:$0xff]  ;;  %755 = vmatpush.xpose.msk.msra.mxu2 %vm426_vm0, %v417_v15 }
  0x4d   : > { %s399_s19 = scalar_lea.vmem %s1346_s4, %s1398_s8  ;;  %489 = vmatpush.msra.mxu1 %v469_v3  ;;  %s1283_s10 = scalar_lea.vmem %s1345_s3, %s1398_s8  ;;  %v416_v9 = vld [vmem:[%s324_s21] sm:$0xff]  ;;  %762 = vmatpush.xpose.msk.msra.mxu3 %vm426_vm0, %v417_v15 }
  0x4e   : > { %v875_v7 = vld [vmem:[%s399_s19] ss:$0 sm:$0xff]  ;;  %444 = vmatpush.msra.mxu0 %v419_v4  ;;  %s404_s12 = scalar_lea.vmem %s1347_s5, %s1398_s8  ;;  %v876_v11 = vld [vmem:[%s399_s19 + $0x1] ss:$0 sm:$0xff]  ;;  %874 = vset.pattern.permute.xlu0 %v1074_v16  ;;  %s1400_s27 = smov (!%p407_p4, %s1053_s27), 1 }
  0x4f   : > { %490 = vmatpush.msra.mxu1 %v468_v5  ;;  %v455_v10 = vmul.f32 %v875_v7, %v416_v9  ;;  %v502_v13 = vmul.f32 %v876_v11, %v416_v9  ;;  %v879_v17 = vld [vmem:[%s404_s12] ss:$0 sm:$0xff]  ;;  %v880_v20 = vld [vmem:[%s404_s12 + $0x1] ss:$0 sm:$0xff]  ;;  %s748_s9 = sshll.u32 %s1400_s27, 2 }
  0x50   : > { %445 = vmatpush.msra.mxu0 %v418_v6  ;;  %v877_v21 = vld [vmem:[%s1283_s10] ss:$0 sm:$0xff]  ;;  %v878_v22 = vld [vmem:[%s1283_s10 + $0x1] ss:$0 sm:$0xff]  ;;  %s412_s14 = sadd.s32 %s748_s9, %s1398_s8 }
  0x51   : > { %491 = vmatpush.msra.mxu1 %v467_v8  ;;  %v456_v12 = vsel %vm426_vm0, %v455_v10, 0.0  ;;  %750 = vmatmul.msk.f32.vlgmr.msra.gmra.mxu0 %vm426_vm0, %v416_v9  ;;  %v503_v14 = vsel %vm426_vm0, %v502_v13, 0.0  ;;  %s749_s16 = sshll.u32 %s412_s14, 3 }
  0x52   : > { %752 = vmatmul.msk.f32.vlgmr.msra.gmra.mxu1 %vm426_vm0, %v416_v9  ;;  %457 = vadd.xlane.f32.xlu0 %v456_v12  ;;  %s414_s6 = scalar_lea.vmem %s1374_s20, %s749_s16 }
  0x5a   : > { %504 = vadd.xlane.f32.xlu0 %v503_v14 }
  0xc5   : > { %v458_v18 = vpop.xlane.xlu0 %457 }
  0xc6   : > { %v463_v19 = vadd.f32 %v879_v17, %v458_v18 }
  0xc8   : > { %465 = vst.msk [vmem:[#allocation3] sm:$0xff] %vm464_vm1, %v463_v19 }
  0xcd   : > { %v505_v23 = vpop.xlane.xlu0 %504 }
  0xce   : > { %v447_v24 = vpop.f32.mrf.mxu0  ;;  %v511_v26 = vadd.f32 %v880_v20, %v505_v23 }
  0xcf   : > { %v493_v25 = vpop.f32.mrf.mxu1  ;;  %v448_v27 = vadd.f32 %v877_v21, %v447_v24  ;;  %v548_v29 = vld [vmem:[#allocation3] sm:$0xff] }
  0xd0   : > { %v494_v28 = vadd.f32 %v878_v22, %v493_v25  ;;  %513 = vst.msk [vmem:[#allocation3 + $0x8] sm:$0xff] %vm464_vm1, %v511_v26  ;;  %552 = vperm.xlu1 %873, %v548_v29  }
  0xd1   : > { %450 = vst.msk [vmem:[#allocation2] sm:$0xff] %vm426_vm0, %v448_v27 }
  0xd2   : > { %496 = vst.msk [vmem:[#allocation2 + $0x8] sm:$0xff] %vm426_vm0, %v494_v28 }
  0xd7   : > { %v549_v30 = vld [vmem:[#allocation3 + $0x8] sm:$0xff] }
  0xd8   : > { %v514_v31 = vld [vmem:[#allocation2] sm:$0xff]  ;;  %557 = vperm.xlu1 %873, %v549_v30  }
  0xd9   : > { %756 = vmatmul.msk.f32.vlgmr.msra.gmra.mxu2 %vm426_vm0, %v514_v31  ;;  %v515_v32 = vld [vmem:[#allocation2 + $0x8] sm:$0xff] }
  0xda   : > { %757 = vmatmul.msk.f32.vlgmr.msra.gmra.mxu3 %vm426_vm0, %v515_v32 }
 0x142   : > { %v553_v33 = vpop.permute.xlu1 %552 }
 0x14a   : > { %v558_v35 = vpop.permute.xlu1 %557 }
 0x15c   : > { %v542_v34 = vpop.f32.mrf.mxu2 }
 0x15d   : > { %v560_v36 = vadd.f32 %v553_v33, %v542_v34  ;;  %v545_v37 = vpop.f32.mrf.mxu3 }
 0x15e   : > { %v561_v38 = vadd.f32 %v558_v35, %v545_v37 }
 0x15f   : > { %563 = vst.msk [vmem:[%s414_s6] sm:$0xff] %vm562_vm2, %v560_v36 }
 0x160   : > { %564 = vst.msk [vmem:[%s414_s6 + $0x8] sm:$0xff] %vm562_vm2, %v561_v38 }
 0x161 PF: > { %s22_s7 = sadd.s32 1, %s1069_s7   ;;  %s1375_s21 = sld [smem:[#allocation12_spill]] }
 0x162   : > { %p19_p2 = scmp.ge.s32.totalorder %s22_s7, 6   ;;  %s1376_s27 = sld [smem:[#allocation19_spill]] }
 0x163   : > { %s1377_s26 = sld [smem:[#allocation13_spill]]  ;;  %s1383_s22 = smov %s1037_s23 }
 0x164   : > { %s1378_s29 = sld [smem:[#allocation18_spill]]  ;;  %s1385_s24 = smov %s1045_s25 }
 0x165   : > { %s1379_s30 = sld [smem:[#allocation14_spill]] }
 0x166   : > { %s1380_s28 = sld [smem:[#allocation15_spill]] }
 0x167   : > { %s1381_s15 = sld [smem:[#allocation16_spill]] }
 0x168   : > { %s1382_s8 = sld [smem:[#allocation17_spill]]  ;;  %s1384_s23 = smov %s1376_s27 }
 0x169   : > { %s1386_s25 = smov %s1377_s26 }
 0x16a   : > { %s1387_s26 = smov %s1378_s29  ;;  %21 = sbr.rel (!%p19_p2) target bundleno = 12 (0xc), region = 116 }
 0x16b   : > { %s1388_s27 = smov %s1379_s30 }
 0x16d   : > { %s1389_s29 = smov %s1381_s15 }
 0x16e   : > { %s1390_s30 = smov %s1382_s8 }
 0x16f   :  { %595 = vsyncpa [#allocation5], 1 }
 0x170   :  { %597 = vsyncpa [#allocation5 + $0x1], 1 }
 0x171   :  { %598 = vsyncpa [#allocation7], 1 }
 0x172   :  { %600 = vsyncpa [#allocation7 + $0x1], 1 }

// kernel: _biaffine_apply.1
= control target key start
LH: loop header
LB: loop body
LE: loop exit
PB: predicated region body
PF: predicated region fallthrough
CT: control target
= control target key end

     0   :  { %s1372_s0 = inlined_call_operand.hbm [shape: f32[2,8,32], index: 0, kind: input, shape index: {}]   ;;  %s1373_s1 = inlined_call_operand.hbm [shape: f32[2,8,32], index: 1, kind: input, shape index: {}]   ;;  %s1374_s2 = inlined_call_operand.hbm [shape: f32[4,32,32], index: 2, kind: input, shape index: {}]   ;;  %s1375_s3 = inlined_call_operand.vmem [shape: f32[4,1,32], index: 3, kind: input, shape index: {}]   ;;  %s1376_s4 = inlined_call_operand.vmem [shape: f32[4,1,32], index: 4, kind: input, shape index: {}]   ;;  %s1377_s5 = inlined_call_operand.vmem [shape: f32[4,1,1], index: 5, kind: input, shape index: {}]   ;;  %s1378_s6 = inlined_call_operand.vmem [shape: f32[2,4,8,8], index: 6, kind: output, shape index: {}]  }
   0x1   :  { %1385 = sst [smem:[#allocation19_spill]] %s1373_s1 }
   0x2   :  { %1386 = sst [smem:[#allocation20_spill]] %s1375_s3 }
   0x3   :  { %1387 = sst [smem:[#allocation21_spill]] %s1376_s4 }
   0x4   :  { %1388 = sst [smem:[#allocation22_spill]] %s1377_s5 }
   0x5   :  { %1389 = sst [smem:[#allocation23_spill]] %s1378_s6 }
   0x6   :  { %11 = vsyncpa [#allocation5], 0 }
   0x7   :  { %13 = vsyncpa [#allocation5 + $0x1], 0 }
   0x8   :  { %14 = vsyncpa [#allocation7], 0 }
   0x9   :  { %16 = vsyncpa [#allocation7 + $0x1], 0  ;;  %s1128_s21 = smov 0   ;;  %s1130_s22 = smov 0  }
   0xa   :  { %s1132_s23 = smov 0   ;;  %s1134_s24 = smov 0  }
   0xb   :  { %s1136_s25 = smov 0   ;;  %s1138_s26 = smov 0  }
   0xc   :  { %s1140_s27 = smov 0   ;;  %s1142_s28 = smov 0  }
   0xd   :  { %s1144_s29 = smov 0   ;;  %s1146_s30 = smov 0  }
   0xe   :  { %s1148_s7 = smov 0  }
   0xf LB: > { %1390 = sst [smem:[#allocation12_spill]] %s1068_s26  ;;  %s1379_s8 = sadd.s32 4294967295, %s1088_s7   ;;  %s1088_s7 = sphi %s1148_s7, %s22_s7   ;;  %s1084_s30 = sphi %s1146_s30, %s1423_s30   ;;  %s1080_s29 = sphi %s1144_s29, %s1415_s29   ;;  %s1076_s28 = sphi %s1142_s28, %s1422_s28   ;;  %s1072_s27 = sphi %s1140_s27, %s1414_s27   ;;  %s1068_s26 = sphi %s1138_s26, %s1413_s26   ;;  %s1064_s25 = sphi %s1136_s25, %s1421_s25   ;;  %s1060_s24 = sphi %s1134_s24, %s1420_s24   ;;  %s1056_s23 = sphi %s1132_s23, %s1419_s23   ;;  %s1052_s22 = sphi %s1130_s22, %s1418_s22   ;;  %s1048_s21 = sphi %s1128_s21, %s1417_s21  }
  0x10   : > { %1391 = sst [smem:[#allocation13_spill]] %s1072_s27  ;;  %s31_s9 = sadd.s32 1, %s1080_s29 }
  0x11   : > { %1392 = sst [smem:[#allocation14_spill]] %s1080_s29  ;;  %p32_p0 = scmp.ge.s32.totalorder %s31_s9, 2 }
  0x12   : > { %s34_s10 = sadd.s32 1, %s1084_s30  ;;  %s41_s11 = sadd.s32 1, %s1068_s26 }
  0x13   : > { %p48_p1 = scmp.ne.s32.totalorder %s1068_s26, %s1064_s25  ;;  %s1425_s9 = smov (%p32_p0, %s31_s9), 0 }
  0x14   : > { %1393 = sst [smem:[#allocation15_spill]] %s1425_s9  ;;  %s1427_s10 = smov (!%p32_p0, %s34_s10), %s1084_s30 }
  0x15   : > { %s38_s12 = ssub.s32 %s1080_s29, %s1425_s9  ;;  %p49_p2 = scmp.eq.s32.totalorder %s1088_s7, 0 }
  0x16   : > { %p36_p3 = scmp.ge.s32.totalorder %s1427_s10, 2  ;;  %p39_p4 = scmp.eq.s32.totalorder %s38_s12, 0 }
  0x17   : > { %p1195_p5 = por %p49_p2, %p48_p1  ;;  %p54_p6 = scmp.ne.s32.totalorder %s1064_s25, %s1060_s24 }
  0x18   : > { %s1429_s10 = smov (%p36_p3, %s1427_s10), 0  ;;  %p55_p7 = scmp.eq.s32.totalorder %s1379_s8, 0 }
  0x19   : > { %1395 = sst [smem:[#allocation16_spill]] %s1429_s10  ;;  %s90_s15 = ssub.s32 %s1084_s30, %s1429_s10 }
  0x1a   : > { %s1203_s14 = scalar_select %p39_p4, %s1068_s26, %s41_s11  }
  0x1b   : > { %p91_p8 = scmp.eq.s32.totalorder %s90_s15, 0  ;;  %s93_s16 = sadd.s32 1, %s1056_s23 }
  0x1c   : > { %1396 = sst [smem:[#allocation17_spill]] %s1203_s14  ;;  %p1210_p9 = por %p55_p7, %p54_p6 }
  0x1d   : > { %p100_p10 = scmp.ne.s32.totalorder %s1056_s23, %s1052_s22  ;;  %p106_p12 = scmp.ne.s32.totalorder %s1052_s22, %s1048_s21 }
  0x1e   : > { %s1217_s18 = scalar_select %p91_p8, %s1056_s23, %s93_s16  }
  0x1f   : > { %p1221_p11 = por %p100_p10, %p49_p2  ;;  %p800_p13 = scmp.lt.s32.totalorder %s1088_s7, 4 }
  0x20   : > { %1398 = sst [smem:[#allocation18_spill]] %s1217_s18  ;;  %p1228_p0 = por %p106_p12, %p55_p7 }
  0x21   : > { %s236_s24 = sand.u32 1, %s1068_s26   ;;  %s750_s12 = sshll.u32 %s1080_s29, 3 }
  0x22   : > { %s749_s11 = sshll.u32 %s236_s24, 3  ;;  %p1238_p1 = pnand %p800_p13, %p1195_p5 }
  0x23   : > { %s255_s21 = sand.u32 1, %s1088_s7   ;;  %s1402_s1 = sld [smem:[#allocation19_spill]] }
  0x24   : > { %s259_s14 = scalar_lea.vmem [#allocation6], %s749_s11  ;;  %s1246_s13 = scalar_lea.sflag [#allocation7], %s255_s21 }
  0x25   : > { %s267_s18 = sshll.u32 %s259_s14, 4  ;;  %p1255_p2 = pnand %p800_p13, %p1221_p11  ;;  %s268_s18 = int_to_ptr.vmem [resolvable:$true] %s267_s18 }
  0x26   : > { %p757_p3 = scmp.ge.s32.totalorder %s1088_s7, 1  ;;  %p319_p4 = scmp.lt.s32.totalorder %s1088_s7, 5 }
  0x27   : > { %s244_s21 = scalar_lea.hbm %s1372_s0, %s750_s12  ;;  %s782_s19 = sshll.u32 %s1084_s30, 6 }
  0x28   : > { %p1261_p5 = pnand %p757_p3, %p319_p4  ;;  %s246_s16 = sshll.u32 %s244_s21, 4  ;;  %s247_s16 = int_to_ptr.hbm [resolvable:$true] %s246_s16 }
  0x29   : > { %s263_s10 = scalar_lea.hbm %s1402_s1, %s750_s12  ;;  %s240_s1 = scalar_lea.vmem [#allocation4], %s749_s11 }
  0x2a   : > { %s265_s9 = sshll.u32 %s263_s10, 4  ;;  %s248_s26 = sshll.u32 %s240_s1, 4  ;;  %s266_s9 = int_to_ptr.hbm [resolvable:$true] %s265_s9  ;;  %s249_s26 = int_to_ptr.vmem [resolvable:$true] %s248_s26 }
  0x2b   : > { %796 = dma.hbm_to_vmem [thread:$0]  (!%p1238_p1), %s266_s9, 128, %s268_s18, %s1246_s13  }
  0x2c   : > { %s237_s9 = scalar_lea.sflag [#allocation5], %s236_s24  ;;  %s276_s18 = sand.u32 1, %s1056_s23  }
  0x2d   : > { %793 = dma.hbm_to_vmem [thread:$0]  (!%p1238_p1), %s247_s16, 128, %s249_s26, %s237_s9  }
  0x2e   : > { %s753_s6 = sshll.u32 %s276_s18, 6  ;;  %s284_s3 = scalar_lea.hbm %s1374_s2, %s782_s19 }
  0x2f   : > { %s285_s4 = sshll.u32 %s284_s3, 4  ;;  %s278_s12 = scalar_lea.vmem [#allocation8], %s753_s6  ;;  %s286_s4 = int_to_ptr.hbm [resolvable:$true] %s285_s4 }
  0x30   : > { %s287_s10 = sshll.u32 %s278_s12, 4  ;;  %s1090_s1 = smov 128   ;;  %s288_s10 = int_to_ptr.vmem [resolvable:$true] %s287_s10 }
  0x31   : > { %s1091_s11 = smov 8   ;;  %323 = sbr.rel (%p1261_p5) target bundleno = 344 (0x158), region = 44 }
  0x32   : > { %799 = dma.hbm_to_vmem [thread:$0]  (!%p1255_p2), %s286_s4, 1024, %s288_s10, %s1246_s13, %s1090_s1, %s1090_s1, %s1091_s11  }
  0x33   : > { %s325_s26 = sand.u32 (!%p1261_p5), 1, %s1064_s25  }
  0x34   : > { %s1281_s24 = sshll.u32 (!%p1261_p5), %s325_s26, 3  ;;  %s326_s5 = scalar_lea.sflag (!%p1261_p5), [#allocation5], %s325_s26 }
  0x35   : > { %s329_s27 = scalar_lea.vmem (!%p1261_p5), [#allocation4], %s1281_s24 }
  0x36   : > { %1035 = dma.done.wait (%p1210_p9), %s326_s5, 128  }
  0x37   : > { %1037 = vsyncadd (%p1210_p9), %s326_s5, 4294967168  ;;  %s1405_s3 = sadd.s32 4294967295, %s1088_s7   ;;  %s339_s29 = scalar_lea.vmem [#allocation6], %s1281_s24 }
  0x38   : > { %s335_s4 = sand.u32 1, %s1405_s3  }
  0x39   : > { %s336_s6 = scalar_lea.sflag [#allocation7], %s335_s4 }
  0x3a   : > { %1039 = dma.done.wait (%p1210_p9), %s336_s6, 128  }
  0x3b   : > { %1041 = vsyncadd (%p1210_p9), %s336_s6, 4294967168  ;;  %s347_s15 = sand.u32 1, %s1052_s22  }
  0x3c   : > { %s760_s13 = sshll.u32 %s347_s15, 6 }
  0x3d   : > { %s349_s8 = scalar_lea.vmem [#allocation8], %s760_s13 }
  0x3e   : > { %1043 = dma.done.wait (%p1228_p0), %s336_s6, 1024  }
  0x3f   : > { %1045 = vsyncadd (%p1228_p0), %s336_s6, 4294966272  ;;  %s761_s14 = sshll.u32 %s1076_s28, 1  ;;  %v436_v0 = vld [vmem:[%s349_s8 + $0x18] sm:$0xff]  ;;  %v435_v2 = vld [vmem:[%s349_s8 + $0x10] sm:$0xff]  ;;  %s1406_s16 = sld [smem:[#allocation21_spill]]  ;;  %vm441_vm0 = vcmask 261120  }
  0x40   : > { %p407_p6 = scmp.lt.s32.totalorder %s761_s14, 3  ;;  %v771_v1 = vld [vmem:[%s349_s8 + $0x38] sm:$0xff]  ;;  %457 = vmatpush.msra.mxu0 %v436_v0  ;;  %v770_v3 = vld [vmem:[%s349_s8 + $0x30] sm:$0xff]  ;;  %v434_v4 = vld [vmem:[%s349_s8 + $0x8] sm:$0xff]  ;;  %s1407_s18 = sld [smem:[#allocation20_spill]]  ;;  %v1092_v16 = vmov 0  }
  0x41   : > { %503 = vmatpush.msra.mxu1 %v771_v1  ;;  %v769_v5 = vld [vmem:[%s349_s8 + $0x28] sm:$0xff]  ;;  %v433_v6 = vld [vmem:[%s349_s8] sm:$0xff]  ;;  %s1408_s1 = sld [smem:[#allocation22_spill]]  ;;  %v432_v15 = vld [vmem:[%s339_s29] sm:$0xff]  ;;  %892 = vset.pattern.permute.xlu1 %v1092_v16  ;;  %vm479_vm1 = vcmask 7168   ;;  %vm577_vm2 = vcmask 64512  }
  0x42   : > { %s1431_s14 = smov (!%p407_p6, %s761_s14), 3  ;;  %458 = vmatpush.msra.mxu0 %v435_v2  ;;  %v768_v8 = vld [vmem:[%s349_s8 + $0x20] sm:$0xff]  ;;  %776 = vmatpush.xpose.msk.msra.mxu2 %vm441_vm0, %v432_v15  ;;  %s1409_s26 = sld [smem:[#allocation13_spill]] }
  0x43   : > { %504 = vmatpush.msra.mxu1 %v770_v3  ;;  %v431_v9 = vld [vmem:[%s329_s27] sm:$0xff]  ;;  %783 = vmatpush.xpose.msk.msra.mxu3 %vm441_vm0, %v432_v15  ;;  %s1410_s6 = sld [smem:[#allocation23_spill]] }
  0x44   : > { %459 = vmatpush.msra.mxu0 %v434_v4  ;;  %893 = vset.pattern.permute.xlu0 %v1092_v16 }
  0x45   : > { %s414_s9 = scalar_lea.vmem %s1406_s16, %s1431_s14  ;;  %505 = vmatpush.msra.mxu1 %v769_v5 }
  0x46   : > { %v894_v7 = vld [vmem:[%s414_s9] ss:$0 sm:$0xff]  ;;  %s1311_s19 = scalar_lea.vmem %s1407_s18, %s1431_s14  ;;  %v895_v11 = vld [vmem:[%s414_s9 + $0x1] ss:$0 sm:$0xff]  ;;  %460 = vmatpush.msra.mxu0 %v433_v6 }
  0x47   : > { %v470_v10 = vmul.f32 %v894_v7, %v431_v9  ;;  %s419_s11 = scalar_lea.vmem %s1408_s1, %s1431_s14  ;;  %506 = vmatpush.msra.mxu1 %v768_v8  ;;  %767 = vmatmul.msk.f32.vlgmr.msra.gmra.mxu0 %vm441_vm0, %v431_v9  ;;  %v517_v13 = vmul.f32 %v895_v11, %v431_v9  ;;  %v896_v21 = vld [vmem:[%s1311_s19] ss:$0 sm:$0xff]  ;;  %v897_v22 = vld [vmem:[%s1311_s19 + $0x1] ss:$0 sm:$0xff] }
  0x48   : > { %773 = vmatmul.msk.f32.vlgmr.msra.gmra.mxu1 %vm441_vm0, %v431_v9  ;;  %v898_v17 = vld [vmem:[%s419_s11] ss:$0 sm:$0xff]  ;;  %v899_v20 = vld [vmem:[%s419_s11 + $0x1] ss:$0 sm:$0xff]  ;;  %p422_p7 = scmp.lt.s32.totalorder %s1409_s26, 1 }
  0x49   : > { %v471_v12 = vsel %vm441_vm0, %v470_v10, 0.0  ;;  %v518_v14 = vsel %vm441_vm0, %v517_v13, 0.0 }
  0x4a   : > { %472 = vadd.xlane.f32.xlu0 %v471_v12  ;;  %s1433_s26 = smov (!%p422_p7, %s1409_s26), 1 }
  0x4b   : > { %s765_s24 = sshll.u32 %s1433_s26, 2 }
  0x4c   : > { %s427_s5 = sadd.s32 %s765_s24, %s1431_s14 }
  0x4d   : > { %s766_s27 = sshll.u32 %s427_s5, 3 }
  0x4e   : > { %s429_s29 = scalar_lea.vmem %s1410_s6, %s766_s27 }
  0x52   : > { %519 = vadd.xlane.f32.xlu0 %v518_v14 }
  0xbd   : > { %v473_v18 = vpop.xlane.xlu0 %472 }
  0xbe   : > { %v478_v19 = vadd.f32 %v898_v17, %v473_v18 }
  0xc0   : > { %480 = vst.msk [vmem:[#allocation3] sm:$0xff] %vm479_vm1, %v478_v19 }
  0xc4   : > { %v462_v24 = vpop.f32.mrf.mxu0 }
  0xc5   : > { %v520_v23 = vpop.xlane.xlu0 %519  ;;  %v508_v25 = vpop.f32.mrf.mxu1  ;;  %v463_v27 = vadd.f32 %v896_v21, %v462_v24 }
  0xc6   : > { %v526_v26 = vadd.f32 %v899_v20, %v520_v23  ;;  %v509_v28 = vadd.f32 %v897_v22, %v508_v25 }
  0xc7   : > { %v563_v29 = vld [vmem:[#allocation3] sm:$0xff]  ;;  %465 = vst.msk [vmem:[#allocation2] sm:$0xff] %vm441_vm0, %v463_v27 }
  0xc8   : > { %528 = vst.msk [vmem:[#allocation3 + $0x8] sm:$0xff] %vm479_vm1, %v526_v26  ;;  %567 = vperm.xlu1 %892, %v563_v29  }
  0xc9   : > { %511 = vst.msk [vmem:[#allocation2 + $0x8] sm:$0xff] %vm441_vm0, %v509_v28 }
  0xce   : > { %v529_v31 = vld [vmem:[#allocation2] sm:$0xff] }
  0xcf   : > { %v564_v30 = vld [vmem:[#allocation3 + $0x8] sm:$0xff]  ;;  %777 = vmatmul.msk.f32.vlgmr.msra.gmra.mxu2 %vm441_vm0, %v529_v31 }
  0xd0   : > { %572 = vperm.xlu1 %892, %v564_v30   ;;  %v530_v32 = vld [vmem:[#allocation2 + $0x8] sm:$0xff] }
  0xd1   : > { %778 = vmatmul.msk.f32.vlgmr.msra.gmra.mxu3 %vm441_vm0, %v530_v32 }
 0x13a   : > { %v568_v33 = vpop.permute.xlu1 %567 }
 0x142   : > { %v573_v35 = vpop.permute.xlu1 %572 }
 0x152   : > { %v557_v34 = vpop.f32.mrf.mxu2 }
 0x153   : > { %v575_v36 = vadd.f32 %v568_v33, %v557_v34 }
 0x154   : > { %v560_v37 = vpop.f32.mrf.mxu3 }
 0x155   : > { %v576_v38 = vadd.f32 %v573_v35, %v560_v37  ;;  %578 = vst.msk [vmem:[%s429_s29] sm:$0xff] %vm577_vm2, %v575_v36 }
 0x157   : > { %579 = vst.msk [vmem:[%s429_s29 + $0x8] sm:$0xff] %vm577_vm2, %v576_v38 }
 0x158 PF: > { %s22_s7 = sadd.s32 1, %s1088_s7   ;;  %s1411_s15 = sld [smem:[#allocation18_spill]] }
 0x159   : > { %p19_p8 = scmp.ge.s32.totalorder %s22_s7, 6   ;;  %s1412_s13 = sld [smem:[#allocation12_spill]] }
 0x15a   : > { %s1413_s26 = sld [smem:[#allocation17_spill]]  ;;  %s1417_s21 = smov %s1052_s22 }
 0x15b   : > { %s1414_s27 = sld [smem:[#allocation14_spill]]  ;;  %s1418_s22 = smov %s1056_s23 }
 0x15c   : > { %s1415_s29 = sld [smem:[#allocation15_spill]]  ;;  %s1420_s24 = smov %s1064_s25 }
 0x15d   : > { %s1416_s8 = sld [smem:[#allocation16_spill]]  ;;  %s1422_s28 = smov %s1084_s30 }
 0x15e   : > { %s1419_s23 = smov %s1411_s15 }
 0x15f   : > { %s1421_s25 = smov %s1412_s13  ;;  %21 = sbr.rel (!%p19_p8) target bundleno = 15 (0xf), region = 122 }
 0x163   : > { %s1423_s30 = smov %s1416_s8 }
 0x164   :  { %610 = vsyncpa [#allocation5], 1 }
 0x165   :  { %612 = vsyncpa [#allocation5 + $0x1], 1 }
 0x166   :  { %613 = vsyncpa [#allocation7], 1 }
 0x167   :  { %615 = vsyncpa [#allocation7 + $0x1], 1 }

</bundles_post_ra>
